<compile_context>
chip_gen: v6e
topology: v6e:2x2x1
jax: 0.10.0
libtpu: 0.0.40
codegen_flags: <defaults>
</compile_context>

<pallas_src>
import numpy as np
import jax
import jax.numpy as jnp
from jax.experimental import pallas as pl
from jax.experimental.pallas import tpu as pltpu


# ---------------------------------------------------------------------------
# Fused encoder kernel: chain of tiny 2-D matmuls on VMEM-resident data
# ---------------------------------------------------------------------------
def _make_fused_encoder_kernel(taps_per_layer, n_fc_sel):
    """Ref order: [a0, (SxT_1, BT_1, b_1), ..., (SxT_L, BT_L, b_L),
                   Ew, Gw, fcb, out]."""
    n_conv = len(taps_per_layer)

    def kernel(*refs):
        a = refs[0][...]                                   # (N*W0, C0*H0) f32
        idx = 1
        for l in range(n_conv):                            # conv layers (+ReLU)
            sxt_ref, bt_ref, b_ref = refs[idx], refs[idx + 1], refs[idx + 2]
            idx += 3
            acc = None
            for t in range(taps_per_layer[l]):             # one kx tap each
                u = jnp.dot(
                    jnp.dot(sxt_ref[t], a, preferred_element_type=jnp.float32),
                    bt_ref[t], preferred_element_type=jnp.float32)
                acc = u if acc is None else acc + u
            a = jnp.maximum(acc + b_ref[...], 0.0)          # bias + ReLU (f32)
        # final fc (flatten handled by the per-w row selection Ew / Gw split)
        ew_ref, gw_ref, fcb_ref = refs[idx], refs[idx + 1], refs[idx + 2]
        out_ref = refs[-1]
        acc = None
        for w in range(n_fc_sel):
            u = jnp.dot(
                jnp.dot(ew_ref[w], a, preferred_element_type=jnp.float32),
                gw_ref[w], preferred_element_type=jnp.float32)
            acc = u if acc is None else acc + u
        out_ref[...] = (acc + fcb_ref[...]).astype(out_ref.dtype)

    return kernel


# ---------------------------------------------------------------------------
# Build-time (numpy) structural constants and weight folding
# ---------------------------------------------------------------------------
def _conv_out(n, k, s, p):
    return (n + 2 * p - k) // s + 1


def _sel(in_len, out_len, off, stride, pad):
    """0/1 selection S[i, o] = 1 iff i == stride*o + off - pad (in range)."""
    s = np.zeros((in_len, out_len), np.float32)
    for o in range(out_len):
        i = stride * o + off - pad
        if 0 <= i < in_len:
            s[i, o] = 1.0
    return s


def build_encoder(input_size, conv_config, latent_dim, batch):
    H, W, C0 = input_size

    # static per-layer geometry
    layer_dims = []
    cin, h, w = C0, H, W
    for d in conv_config:
        k, s, cout = d["kernel"], d["stride"], d["channel"]
        p = k // 2
        ho, wo = _conv_out(h, k, s, p), _conv_out(w, k, s, p)
        layer_dims.append((cin, h, w, cout, ho, wo, k, s, p))
        cin, h, w = cout, ho, wo
    c_last, h_last, w_last = cin, h, w

    out_cols = max(128, ((2 * latent_dim + 127) // 128) * 128)   # lane-dense out
    out_rows = max(8, ((batch + 7) // 8) * 8)                    # sublane-aligned
    taps = tuple(ld[6] for ld in layer_dims)

    # structural (weight-independent) constants — built once, numpy
    sxt_consts, sy_consts = [], []
    for (ci, hi, wi, co, ho, wo, k, s, p) in layer_dims:
        sxt = np.stack([np.kron(np.eye(batch, dtype=np.float32),
                                _sel(wi, wo, kx, s, p).T) for kx in range(k)])
        sy = np.stack([_sel(hi, ho, ky, s, p) for ky in range(k)])
        sxt_consts.append(sxt)          # (k, N*wo, N*wi)
        sy_consts.append(sy)            # (k, hi, ho)
    ew = np.zeros((w_last, out_rows, batch * w_last), np.float32)
    for wv in range(w_last):
        for n in range(batch):
            ew[wv, n, n * w_last + wv] = 1.0

    def prepare(params):
        """One-time weight folding (rerun only when params change)."""
        ops = []
        for (wt, bs, _s), dims, sy in zip(params["conv"], layer_dims, sy_consts):
            (ci, hi, wi, co, ho, wo, k, s, p) = dims
            wnp = np.asarray(wt, np.float32)                    # (co, ci, k, k)
            bnp = np.asarray(bs, np.float32)
            bt = np.stack([
                np.einsum("ocy,yih->cioh", wnp[:, :, :, kx], sy)
                  .reshape(ci * hi, co * ho)
                for kx in range(k)])                            # (k, ci*hi, co*ho)
            brow = np.repeat(bnp, ho)[None, :]                  # (1, co*ho)
            ops += [sxt_consts[len(ops) // 3], bt, brow]
        fcw = np.asarray(params["fc_w"], np.float32)            # (C*H*W, 2*latent)
        fcb = np.asarray(params["fc_b"], np.float32).reshape(1, -1)
        fcw_r = fcw.reshape(c_last, h_last, w_last, -1)
        gw = np.zeros((w_last, c_last * h_last, out_cols), np.float32)
        gw[:, :, :fcw.shape[1]] = np.transpose(fcw_r, (2, 0, 1, 3)).reshape(
            w_last, c_last * h_last, -1)
        fcb_pad = np.zeros((1, out_cols), np.float32)
        fcb_pad[:, :fcb.shape[1]] = fcb
        ops += [ew, gw, fcb_pad]
        return tuple(jnp.asarray(o) for o in ops)               # device-resident

    kernel = _make_fused_encoder_kernel(taps, w_last)

    @jax.jit
    def forward(x, prepared):
        assert x.shape[0] == batch
        # (N,C,H,W) -> (N*W, C*H): batch on sublanes, no further XLA glue
        a0 = jnp.transpose(x, (0, 3, 1, 2)).reshape(batch * W, C0 * H)
        a0 = a0.astype(jnp.float32)
        operands = (a0,) + prepared

        in_specs = [pl.BlockSpec(op.shape, lambda i, nd=op.ndim: (0,) * nd)
                    for op in operands]

        # advisory cost estimate
        flops = 0
        a_rows, a_cols = a0.shape
        for (ci, hi, wi, co, ho, wo, k, s, p) in layer_dims:
            r_out = batch * wo
            flops += k * (2 * r_out * a_rows * a_cols
                          + 2 * r_out * a_cols * (co * ho))
            a_rows, a_cols = r_out, co * ho
        flops += w_last * (2 * out_rows * a_rows * a_cols
                           + 2 * out_rows * a_cols * out_cols)
        bytes_acc = sum(op.size * op.dtype.itemsize for op in operands)
        bytes_acc += out_rows * out_cols * 4

        out = pl.pallas_call(
            kernel,
            out_shape=jax.ShapeDtypeStruct((out_rows, out_cols), jnp.float32),
            grid=(1,),   # whole problem per step; add a "parallel" batch-row axis for real batches (v7x)
            in_specs=in_specs,
            out_specs=pl.BlockSpec((out_rows, out_cols), lambda i: (0, 0)),
            compiler_params=pltpu.CompilerParams(
                dimension_semantics=("arbitrary",)),
            cost_estimate=pl.CostEstimate(flops=flops, transcendentals=0,
                                          bytes_accessed=bytes_acc),
        )(*operands)

        out = out[:batch, :2 * latent_dim]
        return out[:, :latent_dim], out[:, latent_dim:]

    return prepare, forward


# ---------------------------------------------------------------------------
# Parameters + pure-XLA reference (sanity check only)
# ---------------------------------------------------------------------------
def make_params(input_size, conv_config, latent_dim, key):
    h, w, c = input_size
    in_channels = [c] + [d["channel"] for d in conv_config[:-1]]
    conv_params = []
    for cin, d in zip(in_channels, conv_config):
        cout, k, s = d["channel"], d["kernel"], d["stride"]
        key, kw, kb = jax.random.split(key, 3)
        conv_params.append((0.1 * jax.random.normal(kw, (cout, cin, k, k), jnp.float32),
                            0.1 * jax.random.normal(kb, (cout,), jnp.float32),
                            s))
    factor = 1
    for d in conv_config:
        factor *= d["stride"]
    conv_out_dim = (h // factor) * (w // factor) * conv_config[-1]["channel"]
    key, kw, kb = jax.random.split(key, 3)
    fc_w = 0.05 * jax.random.normal(kw, (conv_out_dim, 2 * latent_dim), jnp.float32)
    fc_b = 0.05 * jax.random.normal(kb, (1, 2 * latent_dim), jnp.float32)
    return {"conv": conv_params, "fc_w": fc_w, "fc_b": fc_b}


def encoder_reference(x, params, latent_dim):
    for (w, b, s) in params["conv"]:
        k = w.shape[2]
        x = jax.lax.conv_general_dilated(
            x, w, window_strides=(s, s),
            padding=[(k // 2, k // 2), (k // 2, k // 2)],
            dimension_numbers=("NCHW", "OIHW", "NCHW"),
            precision=jax.lax.Precision.HIGHEST)
        x = jnp.maximum(x + b[None, :, None, None], 0.0)
    x = x.reshape(x.shape[0], -1)
    out = jnp.dot(x, params["fc_w"], precision=jax.lax.Precision.HIGHEST) + params["fc_b"]
    return out[:, :latent_dim], out[:, latent_dim:]


# ---------------------------------------------------------------------------
if __name__ == "__main__":
    input_size = (16, 16, 4)            # (H, W, C)
    conv_config = [
        {"channel": 8, "kernel": 3, "stride": 2},
        {"channel": 16, "kernel": 3, "stride": 2},
    ]
    latent_dim = 8
    batch = 2

    key = jax.random.PRNGKey(0)
    key, kx = jax.random.split(key)
    x = jax.random.normal(kx, (batch, input_size[2], input_size[0], input_size[1]),
                          jnp.float32)                           # NCHW: (2, 4, 16, 16)
    params = make_params(input_size, conv_config, latent_dim, key)

    prepare, forward = build_encoder(input_size, conv_config, latent_dim, batch)
    prepared = prepare(params)          # one-time weight prep (hoisted out of forward)

    mu_z, logstd_z = forward(x, prepared)
    jax.block_until_ready(mu_z)
    jax.block_until_ready(logstd_z)

    assert mu_z.shape == (batch, latent_dim)
    assert logstd_z.shape == (batch, latent_dim)

    # parity check vs. pure-XLA f32 reference (kernel is f32 end-to-end now)
    mu_ref, logstd_ref = encoder_reference(x, params, latent_dim)
    assert float(jnp.max(jnp.abs(mu_z - mu_ref))) < 1e-2
    assert float(jnp.max(jnp.abs(logstd_z - logstd_ref))) < 1e-2

    print("KERNEL_OK")
</pallas_src>

<mosaic_0001>
module attributes {stable_mosaic.version = 11 : i64} {
  func.func @kernel(%arg0: i32, %arg1: memref<32x64xf32, #tpu.memory_space<vmem>>, %arg2: memref<3x16x32xf32, #tpu.memory_space<vmem>>, %arg3: memref<3x64x64xf32, #tpu.memory_space<vmem>>, %arg4: memref<1x64xf32, #tpu.memory_space<vmem>>, %arg5: memref<3x8x16xf32, #tpu.memory_space<vmem>>, %arg6: memref<3x64x64xf32, #tpu.memory_space<vmem>>, %arg7: memref<1x64xf32, #tpu.memory_space<vmem>>, %arg8: memref<4x8x8xf32, #tpu.memory_space<vmem>>, %arg9: memref<4x64x128xf32, #tpu.memory_space<vmem>>, %arg10: memref<1x128xf32, #tpu.memory_space<vmem>>, %arg11: memref<8x128xf32, #tpu.memory_space<vmem>>) attributes {dimension_semantics = [#tpu.dimension_semantics<arbitrary>], iteration_bounds = array<i64: 1>, scalar_prefetch = 0 : i64, scratch_operands = 0 : i64, tpu.core_type = #tpu.core_type<tc>, window_params = [{pipeline_mode = #tpu.pipeline_mode<synchronous>, transform_indices = @transform_0, window_bounds = array<i64: 32, 64>}, {pipeline_mode = #tpu.pipeline_mode<synchronous>, transform_indices = @transform_1, window_bounds = array<i64: 3, 16, 32>}, {pipeline_mode = #tpu.pipeline_mode<synchronous>, transform_indices = @transform_2, window_bounds = array<i64: 3, 64, 64>}, {pipeline_mode = #tpu.pipeline_mode<synchronous>, transform_indices = @transform_3, window_bounds = array<i64: 1, 64>}, {pipeline_mode = #tpu.pipeline_mode<synchronous>, transform_indices = @transform_4, window_bounds = array<i64: 3, 8, 16>}, {pipeline_mode = #tpu.pipeline_mode<synchronous>, transform_indices = @transform_5, window_bounds = array<i64: 3, 64, 64>}, {pipeline_mode = #tpu.pipeline_mode<synchronous>, transform_indices = @transform_6, window_bounds = array<i64: 1, 64>}, {pipeline_mode = #tpu.pipeline_mode<synchronous>, transform_indices = @transform_7, window_bounds = array<i64: 4, 8, 8>}, {pipeline_mode = #tpu.pipeline_mode<synchronous>, transform_indices = @transform_8, window_bounds = array<i64: 4, 64, 128>}, {pipeline_mode = #tpu.pipeline_mode<synchronous>, transform_indices = @transform_9, window_bounds = array<i64: 1, 128>}, {pipeline_mode = #tpu.pipeline_mode<synchronous>, transform_indices = @transform_10, window_bounds = array<i64: 8, 128>}]} {
    %c0 = arith.constant 0 : index
    %c0_0 = arith.constant 0 : index
    %0 = vector.load %arg1[%c0, %c0_0] : memref<32x64xf32, #tpu.memory_space<vmem>>, vector<32x64xf32>
    %c0_1 = arith.constant 0 : index
    %c0_2 = arith.constant 0 : index
    %c0_3 = arith.constant 0 : index
    %1 = vector.load %arg2[%c0_1, %c0_2, %c0_3] : memref<3x16x32xf32, #tpu.memory_space<vmem>>, vector<1x16x32xf32>
    %2 = vector.shape_cast %1 : vector<1x16x32xf32> to vector<16x32xf32>
    %cst = arith.constant dense<0.000000e+00> : vector<16x64xf32>
    %3 = tpu.matmul %2, %0, %cst {dimension_numbers = #tpu.dot_dimension_numbers<[1], [0], [0], [1], [0, 0, 1, 1], [], []>} : vector<16x32xf32>, vector<32x64xf32>, vector<16x64xf32> -> vector<16x64xf32>
    %c0_4 = arith.constant 0 : index
    %c0_5 = arith.constant 0 : index
    %c0_6 = arith.constant 0 : index
    %4 = vector.load %arg3[%c0_4, %c0_5, %c0_6] : memref<3x64x64xf32, #tpu.memory_space<vmem>>, vector<1x64x64xf32>
    %5 = vector.shape_cast %4 : vector<1x64x64xf32> to vector<64x64xf32>
    %cst_7 = arith.constant dense<0.000000e+00> : vector<16x64xf32>
    %6 = tpu.matmul %3, %5, %cst_7 {dimension_numbers = #tpu.dot_dimension_numbers<[1], [0], [0], [1], [0, 0, 1, 1], [], []>} : vector<16x64xf32>, vector<64x64xf32>, vector<16x64xf32> -> vector<16x64xf32>
    %c1 = arith.constant 1 : index
    %c0_8 = arith.constant 0 : index
    %c0_9 = arith.constant 0 : index
    %7 = vector.load %arg2[%c1, %c0_8, %c0_9] : memref<3x16x32xf32, #tpu.memory_space<vmem>>, vector<1x16x32xf32>
    %8 = vector.shape_cast %7 : vector<1x16x32xf32> to vector<16x32xf32>
    %cst_10 = arith.constant dense<0.000000e+00> : vector<16x64xf32>
    %9 = tpu.matmul %8, %0, %cst_10 {dimension_numbers = #tpu.dot_dimension_numbers<[1], [0], [0], [1], [0, 0, 1, 1], [], []>} : vector<16x32xf32>, vector<32x64xf32>, vector<16x64xf32> -> vector<16x64xf32>
    %c1_11 = arith.constant 1 : index
    %c0_12 = arith.constant 0 : index
    %c0_13 = arith.constant 0 : index
    %10 = vector.load %arg3[%c1_11, %c0_12, %c0_13] : memref<3x64x64xf32, #tpu.memory_space<vmem>>, vector<1x64x64xf32>
    %11 = vector.shape_cast %10 : vector<1x64x64xf32> to vector<64x64xf32>
    %cst_14 = arith.constant dense<0.000000e+00> : vector<16x64xf32>
    %12 = tpu.matmul %9, %11, %cst_14 {dimension_numbers = #tpu.dot_dimension_numbers<[1], [0], [0], [1], [0, 0, 1, 1], [], []>} : vector<16x64xf32>, vector<64x64xf32>, vector<16x64xf32> -> vector<16x64xf32>
    %13 = arith.addf %6, %12 : vector<16x64xf32>
    %c2 = arith.constant 2 : index
    %c0_15 = arith.constant 0 : index
    %c0_16 = arith.constant 0 : index
    %14 = vector.load %arg2[%c2, %c0_15, %c0_16] : memref<3x16x32xf32, #tpu.memory_space<vmem>>, vector<1x16x32xf32>
    %15 = vector.shape_cast %14 : vector<1x16x32xf32> to vector<16x32xf32>
    %cst_17 = arith.constant dense<0.000000e+00> : vector<16x64xf32>
    %16 = tpu.matmul %15, %0, %cst_17 {dimension_numbers = #tpu.dot_dimension_numbers<[1], [0], [0], [1], [0, 0, 1, 1], [], []>} : vector<16x32xf32>, vector<32x64xf32>, vector<16x64xf32> -> vector<16x64xf32>
    %c2_18 = arith.constant 2 : index
    %c0_19 = arith.constant 0 : index
    %c0_20 = arith.constant 0 : index
    %17 = vector.load %arg3[%c2_18, %c0_19, %c0_20] : memref<3x64x64xf32, #tpu.memory_space<vmem>>, vector<1x64x64xf32>
    %18 = vector.shape_cast %17 : vector<1x64x64xf32> to vector<64x64xf32>
    %cst_21 = arith.constant dense<0.000000e+00> : vector<16x64xf32>
    %19 = tpu.matmul %16, %18, %cst_21 {dimension_numbers = #tpu.dot_dimension_numbers<[1], [0], [0], [1], [0, 0, 1, 1], [], []>} : vector<16x64xf32>, vector<64x64xf32>, vector<16x64xf32> -> vector<16x64xf32>
    %20 = arith.addf %13, %19 : vector<16x64xf32>
    %c0_22 = arith.constant 0 : index
    %c0_23 = arith.constant 0 : index
    %21 = vector.load %arg4[%c0_22, %c0_23] : memref<1x64xf32, #tpu.memory_space<vmem>>, vector<1x64xf32>
    %22 = vector.broadcast %21 : vector<1x64xf32> to vector<16x64xf32>
    %23 = arith.addf %20, %22 : vector<16x64xf32>
    %cst_24 = arith.constant 0.000000e+00 : f32
    %24 = vector.broadcast %cst_24 : f32 to vector<16x64xf32>
    %25 = arith.maximumf %23, %24 : vector<16x64xf32>
    %c0_25 = arith.constant 0 : index
    %c0_26 = arith.constant 0 : index
    %c0_27 = arith.constant 0 : index
    %26 = vector.load %arg5[%c0_25, %c0_26, %c0_27] : memref<3x8x16xf32, #tpu.memory_space<vmem>>, vector<1x8x16xf32>
    %27 = vector.shape_cast %26 : vector<1x8x16xf32> to vector<8x16xf32>
    %cst_28 = arith.constant dense<0.000000e+00> : vector<8x64xf32>
    %28 = tpu.matmul %27, %25, %cst_28 {dimension_numbers = #tpu.dot_dimension_numbers<[1], [0], [0], [1], [0, 0, 1, 1], [], []>} : vector<8x16xf32>, vector<16x64xf32>, vector<8x64xf32> -> vector<8x64xf32>
    %c0_29 = arith.constant 0 : index
    %c0_30 = arith.constant 0 : index
    %c0_31 = arith.constant 0 : index
    %29 = vector.load %arg6[%c0_29, %c0_30, %c0_31] : memref<3x64x64xf32, #tpu.memory_space<vmem>>, vector<1x64x64xf32>
    %30 = vector.shape_cast %29 : vector<1x64x64xf32> to vector<64x64xf32>
    %cst_32 = arith.constant dense<0.000000e+00> : vector<8x64xf32>
    %31 = tpu.matmul %28, %30, %cst_32 {dimension_numbers = #tpu.dot_dimension_numbers<[1], [0], [0], [1], [0, 0, 1, 1], [], []>} : vector<8x64xf32>, vector<64x64xf32>, vector<8x64xf32> -> vector<8x64xf32>
    %c1_33 = arith.constant 1 : index
    %c0_34 = arith.constant 0 : index
    %c0_35 = arith.constant 0 : index
    %32 = vector.load %arg5[%c1_33, %c0_34, %c0_35] : memref<3x8x16xf32, #tpu.memory_space<vmem>>, vector<1x8x16xf32>
    %33 = vector.shape_cast %32 : vector<1x8x16xf32> to vector<8x16xf32>
    %cst_36 = arith.constant dense<0.000000e+00> : vector<8x64xf32>
    %34 = tpu.matmul %33, %25, %cst_36 {dimension_numbers = #tpu.dot_dimension_numbers<[1], [0], [0], [1], [0, 0, 1, 1], [], []>} : vector<8x16xf32>, vector<16x64xf32>, vector<8x64xf32> -> vector<8x64xf32>
    %c1_37 = arith.constant 1 : index
    %c0_38 = arith.constant 0 : index
    %c0_39 = arith.constant 0 : index
    %35 = vector.load %arg6[%c1_37, %c0_38, %c0_39] : memref<3x64x64xf32, #tpu.memory_space<vmem>>, vector<1x64x64xf32>
    %36 = vector.shape_cast %35 : vector<1x64x64xf32> to vector<64x64xf32>
    %cst_40 = arith.constant dense<0.000000e+00> : vector<8x64xf32>
    %37 = tpu.matmul %34, %36, %cst_40 {dimension_numbers = #tpu.dot_dimension_numbers<[1], [0], [0], [1], [0, 0, 1, 1], [], []>} : vector<8x64xf32>, vector<64x64xf32>, vector<8x64xf32> -> vector<8x64xf32>
    %38 = arith.addf %31, %37 : vector<8x64xf32>
    %c2_41 = arith.constant 2 : index
    %c0_42 = arith.constant 0 : index
    %c0_43 = arith.constant 0 : index
    %39 = vector.load %arg5[%c2_41, %c0_42, %c0_43] : memref<3x8x16xf32, #tpu.memory_space<vmem>>, vector<1x8x16xf32>
    %40 = vector.shape_cast %39 : vector<1x8x16xf32> to vector<8x16xf32>
    %cst_44 = arith.constant dense<0.000000e+00> : vector<8x64xf32>
    %41 = tpu.matmul %40, %25, %cst_44 {dimension_numbers = #tpu.dot_dimension_numbers<[1], [0], [0], [1], [0, 0, 1, 1], [], []>} : vector<8x16xf32>, vector<16x64xf32>, vector<8x64xf32> -> vector<8x64xf32>
    %c2_45 = arith.constant 2 : index
    %c0_46 = arith.constant 0 : index
    %c0_47 = arith.constant 0 : index
    %42 = vector.load %arg6[%c2_45, %c0_46, %c0_47] : memref<3x64x64xf32, #tpu.memory_space<vmem>>, vector<1x64x64xf32>
    %43 = vector.shape_cast %42 : vector<1x64x64xf32> to vector<64x64xf32>
    %cst_48 = arith.constant dense<0.000000e+00> : vector<8x64xf32>
    %44 = tpu.matmul %41, %43, %cst_48 {dimension_numbers = #tpu.dot_dimension_numbers<[1], [0], [0], [1], [0, 0, 1, 1], [], []>} : vector<8x64xf32>, vector<64x64xf32>, vector<8x64xf32> -> vector<8x64xf32>
    %45 = arith.addf %38, %44 : vector<8x64xf32>
    %c0_49 = arith.constant 0 : index
    %c0_50 = arith.constant 0 : index
    %46 = vector.load %arg7[%c0_49, %c0_50] : memref<1x64xf32, #tpu.memory_space<vmem>>, vector<1x64xf32>
    %47 = vector.broadcast %46 : vector<1x64xf32> to vector<8x64xf32>
    %48 = arith.addf %45, %47 : vector<8x64xf32>
    %cst_51 = arith.constant 0.000000e+00 : f32
    %49 = vector.broadcast %cst_51 : f32 to vector<8x64xf32>
    %50 = arith.maximumf %48, %49 : vector<8x64xf32>
    %c0_52 = arith.constant 0 : index
    %c0_53 = arith.constant 0 : index
    %c0_54 = arith.constant 0 : index
    %51 = vector.load %arg8[%c0_52, %c0_53, %c0_54] : memref<4x8x8xf32, #tpu.memory_space<vmem>>, vector<1x8x8xf32>
    %52 = vector.shape_cast %51 : vector<1x8x8xf32> to vector<8x8xf32>
    %cst_55 = arith.constant dense<0.000000e+00> : vector<8x64xf32>
    %53 = tpu.matmul %52, %50, %cst_55 {dimension_numbers = #tpu.dot_dimension_numbers<[1], [0], [0], [1], [0, 0, 1, 1], [], []>} : vector<8x8xf32>, vector<8x64xf32>, vector<8x64xf32> -> vector<8x64xf32>
    %c0_56 = arith.constant 0 : index
    %c0_57 = arith.constant 0 : index
    %c0_58 = arith.constant 0 : index
    %54 = vector.load %arg9[%c0_56, %c0_57, %c0_58] : memref<4x64x128xf32, #tpu.memory_space<vmem>>, vector<1x64x128xf32>
    %55 = vector.shape_cast %54 : vector<1x64x128xf32> to vector<64x128xf32>
    %cst_59 = arith.constant dense<0.000000e+00> : vector<8x128xf32>
    %56 = tpu.matmul %53, %55, %cst_59 {dimension_numbers = #tpu.dot_dimension_numbers<[1], [0], [0], [1], [0, 0, 1, 1], [], []>} : vector<8x64xf32>, vector<64x128xf32>, vector<8x128xf32> -> vector<8x128xf32>
    %c1_60 = arith.constant 1 : index
    %c0_61 = arith.constant 0 : index
    %c0_62 = arith.constant 0 : index
    %57 = vector.load %arg8[%c1_60, %c0_61, %c0_62] : memref<4x8x8xf32, #tpu.memory_space<vmem>>, vector<1x8x8xf32>
    %58 = vector.shape_cast %57 : vector<1x8x8xf32> to vector<8x8xf32>
    %cst_63 = arith.constant dense<0.000000e+00> : vector<8x64xf32>
    %59 = tpu.matmul %58, %50, %cst_63 {dimension_numbers = #tpu.dot_dimension_numbers<[1], [0], [0], [1], [0, 0, 1, 1], [], []>} : vector<8x8xf32>, vector<8x64xf32>, vector<8x64xf32> -> vector<8x64xf32>
    %c1_64 = arith.constant 1 : index
    %c0_65 = arith.constant 0 : index
    %c0_66 = arith.constant 0 : index
    %60 = vector.load %arg9[%c1_64, %c0_65, %c0_66] : memref<4x64x128xf32, #tpu.memory_space<vmem>>, vector<1x64x128xf32>
    %61 = vector.shape_cast %60 : vector<1x64x128xf32> to vector<64x128xf32>
    %cst_67 = arith.constant dense<0.000000e+00> : vector<8x128xf32>
    %62 = tpu.matmul %59, %61, %cst_67 {dimension_numbers = #tpu.dot_dimension_numbers<[1], [0], [0], [1], [0, 0, 1, 1], [], []>} : vector<8x64xf32>, vector<64x128xf32>, vector<8x128xf32> -> vector<8x128xf32>
    %63 = arith.addf %56, %62 : vector<8x128xf32>
    %c2_68 = arith.constant 2 : index
    %c0_69 = arith.constant 0 : index
    %c0_70 = arith.constant 0 : index
    %64 = vector.load %arg8[%c2_68, %c0_69, %c0_70] : memref<4x8x8xf32, #tpu.memory_space<vmem>>, vector<1x8x8xf32>
    %65 = vector.shape_cast %64 : vector<1x8x8xf32> to vector<8x8xf32>
    %cst_71 = arith.constant dense<0.000000e+00> : vector<8x64xf32>
    %66 = tpu.matmul %65, %50, %cst_71 {dimension_numbers = #tpu.dot_dimension_numbers<[1], [0], [0], [1], [0, 0, 1, 1], [], []>} : vector<8x8xf32>, vector<8x64xf32>, vector<8x64xf32> -> vector<8x64xf32>
    %c2_72 = arith.constant 2 : index
    %c0_73 = arith.constant 0 : index
    %c0_74 = arith.constant 0 : index
    %67 = vector.load %arg9[%c2_72, %c0_73, %c0_74] : memref<4x64x128xf32, #tpu.memory_space<vmem>>, vector<1x64x128xf32>
    %68 = vector.shape_cast %67 : vector<1x64x128xf32> to vector<64x128xf32>
    %cst_75 = arith.constant dense<0.000000e+00> : vector<8x128xf32>
    %69 = tpu.matmul %66, %68, %cst_75 {dimension_numbers = #tpu.dot_dimension_numbers<[1], [0], [0], [1], [0, 0, 1, 1], [], []>} : vector<8x64xf32>, vector<64x128xf32>, vector<8x128xf32> -> vector<8x128xf32>
    %70 = arith.addf %63, %69 : vector<8x128xf32>
    %c3 = arith.constant 3 : index
    %c0_76 = arith.constant 0 : index
    %c0_77 = arith.constant 0 : index
    %71 = vector.load %arg8[%c3, %c0_76, %c0_77] : memref<4x8x8xf32, #tpu.memory_space<vmem>>, vector<1x8x8xf32>
    %72 = vector.shape_cast %71 : vector<1x8x8xf32> to vector<8x8xf32>
    %cst_78 = arith.constant dense<0.000000e+00> : vector<8x64xf32>
    %73 = tpu.matmul %72, %50, %cst_78 {dimension_numbers = #tpu.dot_dimension_numbers<[1], [0], [0], [1], [0, 0, 1, 1], [], []>} : vector<8x8xf32>, vector<8x64xf32>, vector<8x64xf32> -> vector<8x64xf32>
    %c3_79 = arith.constant 3 : index
    %c0_80 = arith.constant 0 : index
    %c0_81 = arith.constant 0 : index
    %74 = vector.load %arg9[%c3_79, %c0_80, %c0_81] : memref<4x64x128xf32, #tpu.memory_space<vmem>>, vector<1x64x128xf32>
    %75 = vector.shape_cast %74 : vector<1x64x128xf32> to vector<64x128xf32>
    %cst_82 = arith.constant dense<0.000000e+00> : vector<8x128xf32>
    %76 = tpu.matmul %73, %75, %cst_82 {dimension_numbers = #tpu.dot_dimension_numbers<[1], [0], [0], [1], [0, 0, 1, 1], [], []>} : vector<8x64xf32>, vector<64x128xf32>, vector<8x128xf32> -> vector<8x128xf32>
    %77 = arith.addf %70, %76 : vector<8x128xf32>
    %c0_83 = arith.constant 0 : index
    %c0_84 = arith.constant 0 : index
    %78 = vector.load %arg10[%c0_83, %c0_84] : memref<1x128xf32, #tpu.memory_space<vmem>>, vector<1x128xf32>
    %79 = vector.broadcast %78 : vector<1x128xf32> to vector<8x128xf32>
    %80 = arith.addf %77, %79 : vector<8x128xf32>
    %c0_85 = arith.constant 0 : index
    %c0_86 = arith.constant 0 : index
    %81 = vector.load %arg11[%c0_85, %c0_86] : memref<8x128xf32, #tpu.memory_space<vmem>>, vector<8x128xf32>
    tpu.vector_store %arg11[%c0_85, %c0_86], %80 {strides = array<i32>} : memref<8x128xf32, #tpu.memory_space<vmem>>, vector<8x128xf32>,
    return
  }
  func.func @transform_0(%arg0: i32) -> (i32, i32) {
    %c0_i32 = arith.constant 0 : i32
    %c0_i32_0 = arith.constant 0 : i32
    %c0_i32_1 = arith.constant 0 : i32
    return %c0_i32, %c0_i32_0 : i32, i32
  }
  func.func @transform_1(%arg0: i32) -> (i32, i32, i32) {
    %c0_i32 = arith.constant 0 : i32
    %c0_i32_0 = arith.constant 0 : i32
    %c0_i32_1 = arith.constant 0 : i32
    %c0_i32_2 = arith.constant 0 : i32
    return %c0_i32, %c0_i32_0, %c0_i32_1 : i32, i32, i32
  }
  func.func @transform_2(%arg0: i32) -> (i32, i32, i32) {
    %c0_i32 = arith.constant 0 : i32
    %c0_i32_0 = arith.constant 0 : i32
    %c0_i32_1 = arith.constant 0 : i32
    %c0_i32_2 = arith.constant 0 : i32
    return %c0_i32, %c0_i32_0, %c0_i32_1 : i32, i32, i32
  }
  func.func @transform_3(%arg0: i32) -> (i32, i32) {
    %c0_i32 = arith.constant 0 : i32
    %c0_i32_0 = arith.constant 0 : i32
    %c0_i32_1 = arith.constant 0 : i32
    return %c0_i32, %c0_i32_0 : i32, i32
  }
  func.func @transform_4(%arg0: i32) -> (i32, i32, i32) {
    %c0_i32 = arith.constant 0 : i32
    %c0_i32_0 = arith.constant 0 : i32
    %c0_i32_1 = arith.constant 0 : i32
    %c0_i32_2 = arith.constant 0 : i32
    return %c0_i32, %c0_i32_0, %c0_i32_1 : i32, i32, i32
  }
  func.func @transform_5(%arg0: i32) -> (i32, i32, i32) {
    %c0_i32 = arith.constant 0 : i32
    %c0_i32_0 = arith.constant 0 : i32
    %c0_i32_1 = arith.constant 0 : i32
    %c0_i32_2 = arith.constant 0 : i32
    return %c0_i32, %c0_i32_0, %c0_i32_1 : i32, i32, i32
  }
  func.func @transform_6(%arg0: i32) -> (i32, i32) {
    %c0_i32 = arith.constant 0 : i32
    %c0_i32_0 = arith.constant 0 : i32
    %c0_i32_1 = arith.constant 0 : i32
    return %c0_i32, %c0_i32_0 : i32, i32
  }
  func.func @transform_7(%arg0: i32) -> (i32, i32, i32) {
    %c0_i32 = arith.constant 0 : i32
    %c0_i32_0 = arith.constant 0 : i32
    %c0_i32_1 = arith.constant 0 : i32
    %c0_i32_2 = arith.constant 0 : i32
    return %c0_i32, %c0_i32_0, %c0_i32_1 : i32, i32, i32
  }
  func.func @transform_8(%arg0: i32) -> (i32, i32, i32) {
    %c0_i32 = arith.constant 0 : i32
    %c0_i32_0 = arith.constant 0 : i32
    %c0_i32_1 = arith.constant 0 : i32
    %c0_i32_2 = arith.constant 0 : i32
    return %c0_i32, %c0_i32_0, %c0_i32_1 : i32, i32, i32
  }
  func.func @transform_9(%arg0: i32) -> (i32, i32) {
    %c0_i32 = arith.constant 0 : i32
    %c0_i32_0 = arith.constant 0 : i32
    %c0_i32_1 = arith.constant 0 : i32
    return %c0_i32, %c0_i32_0 : i32, i32
  }
  func.func @transform_10(%arg0: i32) -> (i32, i32) {
    %c0_i32 = arith.constant 0 : i32
    %c0_i32_0 = arith.constant 0 : i32
    %c0_i32_1 = arith.constant 0 : i32
    return %c0_i32, %c0_i32_0 : i32, i32
  }
}

</mosaic_0001>

<bundles_post_ra>
// kernel: forward.1
= control target key start
LH: loop header
LB: loop body
LE: loop exit
PB: predicated region body
PF: predicated region fallthrough
CT: control target
= control target key end

     0   :  { %15 = vsyncpa [#allocation3], 0  ;;  %s2608_s0 = inlined_call_operand.vmem [shape: f32[32,64], index: 0, kind: input, shape index: {}]   ;;  %s2609_s1 = inlined_call_operand.vmem [shape: f32[3,16,32], index: 1, kind: input, shape index: {}]   ;;  %s2610_s2 = inlined_call_operand.hbm [shape: f32[3,64,64], index: 2, kind: input, shape index: {}]   ;;  %s2611_s3 = inlined_call_operand.vmem [shape: f32[1,64], index: 3, kind: input, shape index: {}]   ;;  %s2612_s4 = inlined_call_operand.vmem [shape: f32[3,8,16], index: 4, kind: input, shape index: {}]   ;;  %s2613_s5 = inlined_call_operand.hbm [shape: f32[3,64,64], index: 5, kind: input, shape index: {}]   ;;  %s2614_s6 = inlined_call_operand.vmem [shape: f32[1,64], index: 6, kind: input, shape index: {}]   ;;  %s2615_s7 = inlined_call_operand.vmem [shape: f32[4,8,8], index: 7, kind: input, shape index: {}]   ;;  %s2616_s8 = inlined_call_operand.vmem [shape: f32[4,64,128], index: 8, kind: input, shape index: {}]   ;;  %s2617_s9 = inlined_call_operand.vmem [shape: f32[1,128], index: 9, kind: input, shape index: {}]   ;;  %s2618_s10 = inlined_call_operand.vmem [shape: f32[8,128], index: 10, kind: output, shape index: {}]  }
   0x1   :  { %16 = vsyncpa [#allocation5], 0  ;;  %s2230_s13 = smov [#allocation2]  }
   0x2   :  { %s26_s14 = sshll.u32 %s2230_s13, 4  ;;  %s27_s14 = int_to_ptr.vmem [resolvable:$true] %s26_s14 }
   0x3   :  { %s2194_s15 = scalar_lea.vmem %s27_s14, 3072  ;;  %p2199_p1 = scmp.lt.s32.totalorder %s27_s14, %s27_s14 }
   0x4   :  { %p2195_p0 = scmp.ne.s32.totalorder %s27_s14, %s2194_s15  ;;  %p2200_p2 = scmp.lt.s32.totalorder %s2194_s15, %s2194_s15 }
   0x6   :  { %p2201_p3 = por %p2200_p2, %p2199_p1 }
   0x8   :  { %p2202_p4 = pnand %p2201_p3, %p2195_p0 }
   0xa   :  { %2205 = shalt.err (!%p2202_p4)
}
   0xb   :  { %s2231_s16 = smov 128   ;;  %s2232_s17 = smov 8  }
   0xc   :  { %32 = dma.hbm_to_vmem [thread:$0]  %s2610_s2, 3072, %s27_s14, [#allocation3], %s2231_s16, %s2231_s16, %s2232_s17  }
   0xd   :  { %s2233_s20 = smov [#allocation4]  }
   0xe   :  { %s42_s21 = sshll.u32 %s2233_s20, 4  ;;  %s43_s21 = int_to_ptr.vmem [resolvable:$true] %s42_s21 }
   0xf   :  { %s2214_s22 = scalar_lea.vmem %s43_s21, 3072  ;;  %p2219_p6 = scmp.lt.s32.totalorder %s43_s21, %s43_s21 }
  0x10   :  { %p2215_p5 = scmp.ne.s32.totalorder %s43_s21, %s2214_s22  ;;  %p2220_p7 = scmp.lt.s32.totalorder %s2214_s22, %s2214_s22 }
  0x12   :  { %p2221_p8 = por %p2220_p7, %p2219_p6 }
  0x14   :  { %p2222_p9 = pnand %p2221_p8, %p2215_p5 }
  0x16   :  { %2225 = shalt.err (!%p2222_p9)
}
  0x17   :  { %48 = dma.hbm_to_vmem [thread:$0]  %s2613_s5, 3072, %s43_s21, [#allocation5], %s2231_s16, %s2231_s16, %s2232_s17  }
  0x18   :  { %2226 = dma.done.wait [#allocation3], 3072  }
  0x19   :  { %2227 = vsyncadd [#allocation3], 4294964224 }
  0x1a   :  { %2228 = dma.done.wait [#allocation5], 3072  }
  0x1b   :  { %2229 = vsyncadd [#allocation5], 4294964224  ;;  %v2300_v0 = vld [vmem:[%s2608_s0 + $0x18] sm:$0xff]  ;;  %v2305_v1 = vld [vmem:[%s2608_s0 + $0x10] sm:$0xff]  ;;  %vm69_vm0 = vcmask 261120   ;;  %vm252_vm1 = vcmask 523264  }
  0x1c   :  { %1916 = vmatprep.subr.mxu0 %v2300_v0  ;;  %1927 = vmatprep.subr.mxu1 %v2300_v0  ;;  %v2314_v2 = vld [vmem:[%s2608_s0 + $0x8] sm:$0xff]  ;;  %v2323_v3 = vld [vmem:[%s2608_s0] sm:$0xff]  ;;  %v1728_v5 = vld [vmem:[%s2609_s1 + $0x10] sm:$0xff]  ;;  %v2234_v42 = vmov 0.0   ;;  %vm2235_vm2 = vmmov 0   ;;  %vm603_vm3 = vcmask 130048  }
  0x1d   :  { %1917 = vmatpush3.msra.mxu0 %v2300_v0  ;;  %1928 = vmatpush3.msra.mxu1 %v2300_v0  ;;  %v67_v4 = vld [vmem:[%s2609_s1] sm:$0xff]  ;;  %v68_v6 = vld [vmem:[%s2609_s1 + $0x8] sm:$0xff]  ;;  %v1729_v7 = vld [vmem:[%s2609_s1 + $0x18] sm:$0xff]  ;;  %vm1083_vm4 = vcmask 64512  }
  0x1e   :  { %1918 = vmatprep.subr.mxu0 %v2305_v1  ;;  %1929 = vmatprep.subr.mxu1 %v2305_v1  ;;  %v251_v8 = vld [vmem:[#allocation2 + $0x78] sm:$0xff]  ;;  %v250_v10 = vld [vmem:[#allocation2 + $0x70] sm:$0xff]  ;;  %v249_v12 = vld [vmem:[#allocation2 + $0x68] sm:$0xff] }
  0x1f   :  { %1919 = vmatpush3.msra.mxu0 %v2305_v1  ;;  %1930 = vmatpush3.msra.mxu1 %v2305_v1  ;;  %v158_v9 = vld [vmem:[#allocation2 + $0x38] sm:$0xff]  ;;  %v157_v11 = vld [vmem:[#allocation2 + $0x30] sm:$0xff]  ;;  %v156_v13 = vld [vmem:[#allocation2 + $0x28] sm:$0xff] }
  0x20   :  { %1920 = vmatprep.subr.mxu0 %v2314_v2  ;;  %1931 = vmatprep.subr.mxu1 %v2314_v2  ;;  %v248_v14 = vld [vmem:[#allocation2 + $0x60] sm:$0xff]  ;;  %v247_v16 = vld [vmem:[#allocation2 + $0x58] sm:$0xff]  ;;  %v246_v18 = vld [vmem:[#allocation2 + $0x50] sm:$0xff] }
  0x21   :  { %1921 = vmatpush3.msra.mxu0 %v2314_v2  ;;  %1932 = vmatpush3.msra.mxu1 %v2314_v2  ;;  %v155_v15 = vld [vmem:[#allocation2 + $0x20] sm:$0xff]  ;;  %v154_v17 = vld [vmem:[#allocation2 + $0x18] sm:$0xff]  ;;  %v153_v19 = vld [vmem:[#allocation2 + $0x10] sm:$0xff] }
  0x22   :  { %1922 = vmatprep.subr.mxu0 %v2323_v3  ;;  %1933 = vmatprep.subr.mxu1 %v2323_v3  ;;  %v245_v20 = vld [vmem:[#allocation2 + $0x48] sm:$0xff]  ;;  %v244_v22 = vld [vmem:[#allocation2 + $0x40] sm:$0xff]  ;;  %v507_v24 = vld [vmem:[#allocation2 + $0xb8] sm:$0xff] }
  0x23   :  { %1923 = vmatpush3.msra.mxu0 %v2323_v3  ;;  %1924 = vmatprep.mubr.msk.f32.mxu0 %vm69_vm0, %v67_v4  ;;  %v152_v21 = vld [vmem:[#allocation2 + $0x8] sm:$0xff]  ;;  %v151_v23 = vld [vmem:[#allocation2] sm:$0xff]  ;;  %v506_v30 = vld [vmem:[#allocation2 + $0xb0] sm:$0xff] }
  0x24   :  { %1934 = vmatpush3.msra.mxu1 %v2323_v3  ;;  %1935 = vmatprep.mubr.msk.f32.mxu1 %vm69_vm0, %v1728_v5  ;;  %v1736_v29 = vld [vmem:[%s2609_s1 + $0x20] sm:$0xff]  ;;  %v505_v31 = vld [vmem:[#allocation2 + $0xa8] sm:$0xff]  ;;  %v503_v34 = vld [vmem:[#allocation2 + $0x98] sm:$0xff] }
  0x25   :  { %1925 = vmatmul.mubr.msk.f32.vlgmr.msra.gmra.mxu0 %vm69_vm0, %v68_v6  ;;  %1936 = vmatmul.mubr.msk.f32.vlgmr.msra.gmra.mxu1 %vm69_vm0, %v1729_v7  ;;  %v1737_v32 = vld [vmem:[%s2609_s1 + $0x28] sm:$0xff]  ;;  %v504_v33 = vld [vmem:[#allocation2 + $0xa0] sm:$0xff]  ;;  %v502_v35 = vld [vmem:[#allocation2 + $0x90] sm:$0xff] }
  0x26   :  { %1938 = vmatprep.subr.mxu0 %v251_v8  ;;  %1957 = vmatprep.subr.mxu1 %v158_v9  ;;  %v501_v36 = vld [vmem:[#allocation2 + $0x88] sm:$0xff]  ;;  %v500_v37 = vld [vmem:[#allocation2 + $0x80] sm:$0xff]  ;;  %v684_v43 = vld [vmem:[#allocation4 + $0x38] sm:$0xff] }
  0x27   :  { %1939 = vmatpush3.msra.mxu0 %v251_v8  ;;  %1958 = vmatpush3.msra.mxu1 %v158_v9  ;;  %v683_v44 = vld [vmem:[#allocation4 + $0x30] sm:$0xff]  ;;  %v682_v45 = vld [vmem:[#allocation4 + $0x28] sm:$0xff]  ;;  %v681_v46 = vld [vmem:[#allocation4 + $0x20] sm:$0xff] }
  0x28   :  { %1940 = vmatprep.subr.mxu0 %v250_v10  ;;  %1959 = vmatprep.subr.mxu1 %v157_v11  ;;  %v680_v47 = vld [vmem:[#allocation4 + $0x18] sm:$0xff]  ;;  %v679_v48 = vld [vmem:[#allocation4 + $0x10] sm:$0xff]  ;;  %v678_v49 = vld [vmem:[#allocation4 + $0x8] sm:$0xff] }
  0x29   :  { %1941 = vmatpush3.msra.mxu0 %v250_v10  ;;  %1960 = vmatpush3.msra.mxu1 %v157_v11  ;;  %v1742_v54 = vld [vmem:[%s2611_s3] ss:$0 sm:$0xff]  ;;  %v764_v5 = vld [vmem:[#allocation4 + $0x58] sm:$0xff]  ;;  %v763_v6 = vld [vmem:[#allocation4 + $0x50] sm:$0xff] }
  0x2a   :  { %1942 = vmatprep.subr.mxu0 %v249_v12  ;;  %1961 = vmatprep.subr.mxu1 %v156_v13  ;;  %v602_v63 = vld [vmem:[%s2612_s4] sm:$0xff]  ;;  %v762_v8 = vld [vmem:[#allocation4 + $0x48] sm:$0xff]  ;;  %v998_v10 = vld [vmem:[#allocation4 + $0xb8] sm:$0xff] }
  0x2b   :  { %1943 = vmatpush3.msra.mxu0 %v249_v12  ;;  %1962 = vmatpush3.msra.mxu1 %v156_v13  ;;  %v765_v4 = vld [vmem:[#allocation4 + $0x60] sm:$0xff]  ;;  %v997_v12 = vld [vmem:[#allocation4 + $0xb0] sm:$0xff] }
  0x2c   :  { %1944 = vmatprep.subr.mxu0 %v248_v14  ;;  %1963 = vmatprep.subr.mxu1 %v155_v15  ;;  %v677_v7 = vld [vmem:[#allocation4] sm:$0xff] }
  0x2d   :  { %1945 = vmatpush3.msra.mxu0 %v248_v14  ;;  %1964 = vmatpush3.msra.mxu1 %v155_v15  ;;  %v761_v9 = vld [vmem:[#allocation4 + $0x40] sm:$0xff]  ;;  %v996_v15 = vld [vmem:[#allocation4 + $0xa8] sm:$0xff] }
  0x2e   :  { %1946 = vmatprep.subr.mxu0 %v247_v16  ;;  %1965 = vmatprep.subr.mxu1 %v154_v17 }
  0x2f   :  { %1947 = vmatpush3.msra.mxu0 %v247_v16  ;;  %1966 = vmatpush3.msra.mxu1 %v154_v17  ;;  %v1748_v17 = vld [vmem:[%s2612_s4 + $0x10] sm:$0xff] }
  0x30   :  { %1948 = vmatprep.subr.mxu0 %v246_v18  ;;  %1967 = vmatprep.subr.mxu1 %v153_v19 }
  0x31   :  { %1949 = vmatpush3.msra.mxu0 %v246_v18  ;;  %1968 = vmatpush3.msra.mxu1 %v153_v19  ;;  %v995_v18 = vld [vmem:[#allocation4 + $0xa0] sm:$0xff]  ;;  %v994_v19 = vld [vmem:[#allocation4 + $0x98] sm:$0xff] }
  0x32   :  { %1950 = vmatprep.subr.mxu0 %v245_v20  ;;  %1969 = vmatprep.subr.mxu1 %v152_v21 }
  0x33   :  { %1951 = vmatpush3.msra.mxu0 %v245_v20  ;;  %1970 = vmatpush3.msra.mxu1 %v152_v21  ;;  %v993_v20 = vld [vmem:[#allocation4 + $0x90] sm:$0xff]  ;;  %v992_v21 = vld [vmem:[#allocation4 + $0x88] sm:$0xff] }
  0x34   :  { %1952 = vmatprep.subr.mxu0 %v244_v22  ;;  %1971 = vmatprep.subr.mxu1 %v151_v23 }
  0x35   :  { %1953 = vmatpush3.msra.mxu0 %v244_v22  ;;  %1972 = vmatpush3.msra.mxu1 %v151_v23  ;;  %v991_v22 = vld [vmem:[#allocation4 + $0x80] sm:$0xff] }
  0x36   :  { %1976 = vmatprep.subr.mxu0 %v2300_v0  ;;  %1987 = vmatprep.subr.mxu1 %v507_v24 }
  0xe5   :  { %v1926_v25 = vpop.f32.mrf.mxu0  ;;  %v1937_v26 = vpop.f32.mrf.mxu1 }
  0xe7   :  { %v142_v27 = vpop.f32.mrf.mxu0  ;;  %v234_v28 = vpop.f32.mrf.mxu1 }
  0xe8   :  { %1954 = vmatprep.mubr.msk.f32.mxu0 %vm252_vm1, %v234_v28  ;;  %1973 = vmatprep.mubr.msk.f32.mxu1 %vm252_vm1, %v142_v27 }
  0xe9   :  { %1955 = vmatmul.mubr.msk.f32.vlgmr.msra.gmra.mxu0 %vm252_vm1, %v1937_v26  ;;  %1974 = vmatmul.mubr.msk.f32.vlgmr.msra.gmra.mxu1 %vm252_vm1, %v1926_v25 }
  0xea   :  { %1977 = vmatpush3.msra.mxu0 %v2300_v0  ;;  %1984 = vmatprep.mubr.msk.f32.mxu0 %vm69_vm0, %v1736_v29  ;;  %v1744_v0 = vld [vmem:[%s2612_s4 + $0x8] sm:$0xff] }
  0xeb   :  { %1978 = vmatprep.subr.mxu0 %v2305_v1  ;;  %1988 = vmatpush3.msra.mxu1 %v507_v24 }
  0xec   :  { %1979 = vmatpush3.msra.mxu0 %v2305_v1  ;;  %1989 = vmatprep.subr.mxu1 %v506_v30  ;;  %v768_v1 = vld [vmem:[#allocation4 + $0x78] sm:$0xff] }
  0xed   :  { %1980 = vmatprep.subr.mxu0 %v2314_v2  ;;  %1990 = vmatpush3.msra.mxu1 %v506_v30  ;;  %v1164_v30 = vld [vmem:[%s2616_s8 + $0x38] sm:$0xff] }
  0xee   :  { %1981 = vmatpush3.msra.mxu0 %v2314_v2  ;;  %1991 = vmatprep.subr.mxu1 %v505_v31  ;;  %v767_v2 = vld [vmem:[#allocation4 + $0x70] sm:$0xff] }
  0xef   :  { %1982 = vmatprep.subr.mxu0 %v2323_v3  ;;  %1992 = vmatpush3.msra.mxu1 %v505_v31  ;;  %v1163_v31 = vld [vmem:[%s2616_s8 + $0x30] sm:$0xff] }
  0xf0   :  { %1983 = vmatpush3.msra.mxu0 %v2323_v3  ;;  %1993 = vmatprep.subr.mxu1 %v504_v33  ;;  %v766_v3 = vld [vmem:[#allocation4 + $0x68] sm:$0xff] }
  0xf1   :  { %1985 = vmatmul.mubr.msk.f32.vlgmr.msra.gmra.mxu0 %vm69_vm0, %v1737_v32  ;;  %1994 = vmatpush3.msra.mxu1 %v504_v33  ;;  %v1162_v32 = vld [vmem:[%s2616_s8 + $0x28] sm:$0xff]  ;;  %v1161_v33 = vld [vmem:[%s2616_s8 + $0x20] sm:$0xff] }
  0xf2   :  { %1995 = vmatprep.subr.mxu1 %v503_v34  ;;  %2006 = vmatprep.subr.mxu0 %v2234_v42 }
  0xf3   :  { %1996 = vmatpush3.msra.mxu1 %v503_v34  ;;  %2010 = vmatprep.mubr.msk.f32.mxu0 %vm2235_vm2, %v2234_v42  ;;  %v1160_v34 = vld [vmem:[%s2616_s8 + $0x18] sm:$0xff] }
  0xf4   :  { %1997 = vmatprep.subr.mxu1 %v502_v35 }
  0xf5   :  { %1998 = vmatpush3.msra.mxu1 %v502_v35  ;;  %v1159_v35 = vld [vmem:[%s2616_s8 + $0x10] sm:$0xff] }
  0xf6   :  { %1999 = vmatprep.subr.mxu1 %v501_v36 }
  0xf7   :  { %2000 = vmatpush3.msra.mxu1 %v501_v36  ;;  %v1158_v36 = vld [vmem:[%s2616_s8 + $0x8] sm:$0xff] }
  0xf8   :  { %2001 = vmatprep.subr.mxu1 %v500_v37 }
  0xf9   :  { %2002 = vmatpush3.msra.mxu1 %v500_v37  ;;  %v1157_v37 = vld [vmem:[%s2616_s8] sm:$0xff] }
  0xfa   :  { %2039 = vmatprep.subr.mxu1 %v2234_v42 }
 0x1a9   :  { %v1956_v38 = vpop.f32.mrf.mxu0  ;;  %v1975_v50 = vpop.f32.mrf.mxu1 }
 0x1aa   :  { %v412_v52 = vadd.f32 %v1975_v50, %v1956_v38  ;;  %v1759_v50 = vld [vmem:[%s2616_s8 + $0x60] sm:$0xff] }
 0x1ab   :  { %v325_v39 = vpop.f32.mrf.mxu0  ;;  %v406_v51 = vpop.f32.mrf.mxu1 }
 0x1ac   :  { %v407_v55 = vadd.f32 %v406_v51, %v325_v39  ;;  %v1751_v39 = vld [vmem:[%s2614_s6] ss:$0 sm:$0xff]  ;;  %v1758_v51 = vld [vmem:[%s2616_s8 + $0x58] sm:$0xff] }
 0x1b1   :  { %v1986_v40 = vpop.f32.mrf.mxu0 }
 0x1b3   :  { %v490_v41 = vpop.f32.mrf.mxu0 }
 0x1b4   :  { %2003 = vmatprep.mubr.msk.f32.mxu1 %vm252_vm1, %v490_v41 }
 0x1b5   :  { %2004 = vmatmul.mubr.msk.f32.vlgmr.msra.gmra.mxu1 %vm252_vm1, %v1986_v40 }
 0x1b6   :  { %2055 = vmatprep.mubr.msk.f32.mxu1 %vm2235_vm2, %v2234_v42  ;;  %2040 = vmatpush3.msra.mxu1 %v684_v43 }
 0x1b7   :  { %2041 = vmatprep.subr.mxu1 %v2234_v42 }
 0x1b8   :  { %2042 = vmatpush3.msra.mxu1 %v683_v44 }
 0x1b9   :  { %2043 = vmatprep.subr.mxu1 %v2234_v42 }
 0x1ba   :  { %2044 = vmatpush3.msra.mxu1 %v682_v45  ;;  %v1082_v45 = vld [vmem:[%s2615_s7] sm:$0xff] }
 0x1bb   :  { %2045 = vmatprep.subr.mxu1 %v2234_v42 }
 0x1bc   :  { %2046 = vmatpush3.msra.mxu1 %v681_v46  ;;  %v1753_v46 = vld [vmem:[%s2615_s7 + $0x8] sm:$0xff] }
 0x1bd   :  { %2047 = vmatprep.subr.mxu1 %v2234_v42 }
 0x1be   :  { %2048 = vmatpush3.msra.mxu1 %v680_v47  ;;  %v1762_v47 = vld [vmem:[%s2616_s8 + $0x78] sm:$0xff] }
 0x1bf   :  { %2049 = vmatprep.subr.mxu1 %v2234_v42 }
 0x1c0   :  { %2050 = vmatpush3.msra.mxu1 %v679_v48  ;;  %v1761_v48 = vld [vmem:[%s2616_s8 + $0x70] sm:$0xff] }
 0x1c1   :  { %2051 = vmatprep.subr.mxu1 %v2234_v42 }
 0x1c2   :  { %2052 = vmatpush3.msra.mxu1 %v678_v49  ;;  %v1760_v49 = vld [vmem:[%s2616_s8 + $0x68] sm:$0xff] }
 0x1c3   :  { %2053 = vmatprep.subr.mxu1 %v2234_v42 }
 0x1c4   :  { %2054 = vmatpush3.msra.mxu1 %v677_v7  ;;  %v1769_v7 = vld [vmem:[%s2616_s8 + $0x90] sm:$0xff] }
 0x1c5   :  { %2065 = vmatprep.subr.mxu1 %v2234_v42 }
 0x275   :  { %v2005_v53 = vpop.f32.mrf.mxu1 }
 0x276   :  { %v590_v56 = vadd.f32 %v2005_v53, %v412_v52  ;;  %v1757_v52 = vld [vmem:[%s2616_s8 + $0x50] sm:$0xff]  ;;  %v1756_v53 = vld [vmem:[%s2616_s8 + $0x48] sm:$0xff] }
 0x277   :  { %v580_v57 = vpop.f32.mrf.mxu1 }
 0x278   :  { %v599_v58 = vadd.f32 %v1742_v54, %v590_v56  ;;  %v589_v59 = vadd.f32 %v580_v57, %v407_v55  ;;  %v1776_v57 = vld [vmem:[%s2615_s7 + $0x18] sm:$0xff] }
 0x27a   :  { %v601_v60 = vmax.f32 %v599_v58, 0.0  ;;  %v598_v61 = vadd.f32 %v1742_v54, %v589_v59  ;;  %v1755_v54 = vld [vmem:[%s2616_s8 + $0x40] sm:$0xff]  ;;  %v1785_v59 = vld [vmem:[%s2616_s8 + $0xf8] sm:$0xff] }
 0x27c   :  { %v600_v62 = vmax.f32 %v598_v61, 0.0  ;;  %2007 = vmatpush3.msra.mxu0 %v601_v60  ;;  %v1765_v61 = vld [vmem:[%s2615_s7 + $0x10] sm:$0xff] }
 0x27d   :  { %2008 = vmatprep.subr.mxu0 %v2234_v42 }
 0x27e   :  { %2009 = vmatpush3.msra.mxu0 %v600_v62 }
 0x27f   :  { %2011 = vmatmul.mubr.msk.f32.vlgmr.msra.gmra.mxu0 %vm603_vm3, %v602_v63  ;;  %2013 = vmatprep.subr.mxu0 %v2234_v42  ;;  %v1774_v63 = vld [vmem:[%s2616_s8 + $0xb8] sm:$0xff] }
 0x280   :  { %2014 = vmatpush3.msra.mxu0 %v601_v60  ;;  %2017 = vmatprep.mubr.msk.f32.mxu0 %vm2235_vm2, %v2234_v42 }
 0x281   :  { %2015 = vmatprep.subr.mxu0 %v2234_v42 }
 0x282   :  { %2016 = vmatpush3.msra.mxu0 %v600_v62 }
 0x283   :  { %2018 = vmatmul.mubr.msk.f32.vlgmr.msra.gmra.mxu0 %vm603_vm3, %v1744_v0  ;;  %2020 = vmatprep.subr.mxu0 %v2234_v42  ;;  %v1783_v0 = vld [vmem:[%s2616_s8 + $0xe8] sm:$0xff] }
 0x284   :  { %2021 = vmatpush3.msra.mxu0 %v768_v1  ;;  %2036 = vmatprep.mubr.msk.f32.mxu0 %vm2235_vm2, %v2234_v42  ;;  %v1773_v1 = vld [vmem:[%s2616_s8 + $0xb0] sm:$0xff] }
 0x285   :  { %2022 = vmatprep.subr.mxu0 %v2234_v42 }
 0x286   :  { %2023 = vmatpush3.msra.mxu0 %v767_v2  ;;  %v1772_v2 = vld [vmem:[%s2616_s8 + $0xa8] sm:$0xff] }
 0x287   :  { %2024 = vmatprep.subr.mxu0 %v2234_v42 }
 0x288   :  { %2025 = vmatpush3.msra.mxu0 %v766_v3  ;;  %v1771_v3 = vld [vmem:[%s2616_s8 + $0xa0] sm:$0xff] }
 0x289   :  { %2026 = vmatprep.subr.mxu0 %v2234_v42 }
 0x28a   :  { %2027 = vmatpush3.msra.mxu0 %v765_v4  ;;  %v1770_v4 = vld [vmem:[%s2616_s8 + $0x98] sm:$0xff] }
 0x28b   :  { %2028 = vmatprep.subr.mxu0 %v2234_v42 }
 0x28c   :  { %2029 = vmatpush3.msra.mxu0 %v764_v5  ;;  %v1782_v5 = vld [vmem:[%s2616_s8 + $0xe0] sm:$0xff] }
 0x28d   :  { %2030 = vmatprep.subr.mxu0 %v2234_v42 }
 0x28e   :  { %2031 = vmatpush3.msra.mxu0 %v763_v6  ;;  %v1781_v6 = vld [vmem:[%s2616_s8 + $0xd8] sm:$0xff] }
 0x28f   :  { %2032 = vmatprep.subr.mxu0 %v2234_v42 }
 0x290   :  { %2033 = vmatpush3.msra.mxu0 %v762_v8  ;;  %v1780_v8 = vld [vmem:[%s2616_s8 + $0xd0] sm:$0xff] }
 0x291   :  { %2034 = vmatprep.subr.mxu0 %v2234_v42 }
 0x292   :  { %2035 = vmatpush3.msra.mxu0 %v761_v9  ;;  %v1768_v9 = vld [vmem:[%s2616_s8 + $0x88] sm:$0xff] }
 0x293   :  { %2058 = vmatprep.subr.mxu0 %v2234_v42 }
 0x33f   :  { %v673_v11 = vpop.f32.mrf.mxu0 }
 0x340   :  { %2056 = vmatmul.mubr.msk.f32.vlgmr.msra.gmra.mxu1 %vm252_vm1, %v673_v11  ;;  %v1767_v11 = vld [vmem:[%s2616_s8 + $0x80] sm:$0xff] }
 0x341   :  { %v2012_v13 = vpop.f32.mrf.mxu0  ;;  %2066 = vmatpush3.msra.mxu1 %v998_v10  ;;  %2081 = vmatprep.mubr.msk.f32.mxu1 %vm2235_vm2, %v2234_v42  ;;  %v1779_v10 = vld [vmem:[%s2616_s8 + $0xc8] sm:$0xff] }
 0x342   :  { %2067 = vmatprep.subr.mxu1 %v2234_v42 }
 0x343   :  { %v756_v14 = vpop.f32.mrf.mxu0  ;;  %2068 = vmatpush3.msra.mxu1 %v997_v12  ;;  %v1778_v12 = vld [vmem:[%s2616_s8 + $0xc0] sm:$0xff] }
 0x344   :  { %2037 = vmatmul.mubr.msk.f32.vlgmr.msra.gmra.mxu0 %vm252_vm1, %v756_v14  ;;  %2069 = vmatprep.subr.mxu1 %v2234_v42 }
 0x345   :  { %2059 = vmatpush3.msra.mxu0 %v601_v60  ;;  %v2019_v16 = vpop.f32.mrf.mxu0  ;;  %2062 = vmatprep.mubr.msk.f32.mxu0 %vm2235_vm2, %v2234_v42 }
 0x346   :  { %2060 = vmatprep.subr.mxu0 %v2234_v42  ;;  %2070 = vmatpush3.msra.mxu1 %v996_v15 }
 0x347   :  { %2061 = vmatpush3.msra.mxu0 %v600_v62  ;;  %2071 = vmatprep.subr.mxu1 %v2234_v42  ;;  %v1784_v62 = vld [vmem:[%s2616_s8 + $0xf0] sm:$0xff] }
 0x348   :  { %2063 = vmatmul.mubr.msk.f32.vlgmr.msra.gmra.mxu0 %vm603_vm3, %v1748_v17  ;;  %2084 = vmatprep.subr.mxu0 %v2234_v42 }
 0x349   :  { %2086 = vmatprep.mubr.msk.f32.mxu0 %vm2235_vm2, %v2234_v42  ;;  %2072 = vmatpush3.msra.mxu1 %v995_v18 }
 0x34a   :  { %2073 = vmatprep.subr.mxu1 %v2234_v42 }
 0x34b   :  { %2074 = vmatpush3.msra.mxu1 %v994_v19 }
 0x34c   :  { %2075 = vmatprep.subr.mxu1 %v2234_v42 }
 0x34d   :  { %2076 = vmatpush3.msra.mxu1 %v993_v20 }
 0x34e   :  { %2077 = vmatprep.subr.mxu1 %v2234_v42 }
 0x34f   :  { %2078 = vmatpush3.msra.mxu1 %v992_v21 }
 0x350   :  { %2079 = vmatprep.subr.mxu1 %v2234_v42 }
 0x351   :  { %2080 = vmatpush3.msra.mxu1 %v991_v22 }
 0x352   :  { %2113 = vmatprep.subr.mxu1 %v2234_v42 }
 0x400   :  { %v911_v23 = vpop.f32.mrf.mxu1 }
 0x402   :  { %v2057_v24 = vpop.f32.mrf.mxu1 }
 0x404   :  { %v838_v25 = vpop.f32.mrf.mxu0 }
 0x405   :  { %v912_v26 = vadd.f32 %v911_v23, %v838_v25  ;;  %v1787_v25 = vld [vmem:[%s2617_s9] ss:$0 sm:$0xff] }
 0x406   :  { %v2038_v27 = vpop.f32.mrf.mxu0 }
 0x408   :  { %v986_v28 = vpop.f32.mrf.mxu0 }
 0x409   :  { %2082 = vmatmul.mubr.msk.f32.vlgmr.msra.gmra.mxu1 %vm252_vm1, %v986_v28 }
 0x40a   :  { %v2064_v29 = vpop.f32.mrf.mxu0  ;;  %2129 = vmatprep.mubr.msk.f32.mxu1 %vm2235_vm2, %v2234_v42  ;;  %2114 = vmatpush3.msra.mxu1 %v1164_v30 }
 0x40b   :  { %2115 = vmatprep.subr.mxu1 %v2234_v42 }
 0x40c   :  { %2116 = vmatpush3.msra.mxu1 %v1163_v31 }
 0x40d   :  { %2117 = vmatprep.subr.mxu1 %v2234_v42 }
 0x40e   :  { %2118 = vmatpush3.msra.mxu1 %v1162_v32 }
 0x40f   :  { %2119 = vmatprep.subr.mxu1 %v2234_v42 }
 0x410   :  { %2120 = vmatpush3.msra.mxu1 %v1161_v33 }
 0x411   :  { %2121 = vmatprep.subr.mxu1 %v2234_v42 }
 0x412   :  { %2122 = vmatpush3.msra.mxu1 %v1160_v34 }
 0x413   :  { %2123 = vmatprep.subr.mxu1 %v2234_v42 }
 0x414   :  { %2124 = vmatpush3.msra.mxu1 %v1159_v35 }
 0x415   :  { %2125 = vmatprep.subr.mxu1 %v2234_v42 }
 0x416   :  { %2126 = vmatpush3.msra.mxu1 %v1158_v36 }
 0x417   :  { %2127 = vmatprep.subr.mxu1 %v2234_v42 }
 0x418   :  { %2128 = vmatpush3.msra.mxu1 %v1157_v37 }
 0x419   :  { %2156 = vmatprep.subr.mxu1 %v2234_v42 }
 0x4c9   :  { %v1068_v38 = vpop.f32.mrf.mxu1 }
 0x4ca   :  { %v1072_v40 = vadd.f32 %v1068_v38, %v912_v26 }
 0x4cb   :  { %v2083_v41 = vpop.f32.mrf.mxu1 }
 0x4cc   :  { %v1080_v43 = vadd.f32 %v1751_v39, %v1072_v40 }
 0x4ce   :  { %v1081_v44 = vmax.f32 %v1080_v43, 0.0 }
 0x4d0   :  { %2085 = vmatpush3.msra.mxu0 %v1081_v44 }
 0x4d1   :  { %2087 = vmatmul.mubr.msk.f32.vlgmr.msra.gmra.mxu0 %vm1083_vm4, %v1082_v45  ;;  %2089 = vmatprep.subr.mxu0 %v2234_v42 }
 0x4d2   :  { %2090 = vmatpush3.msra.mxu0 %v1081_v44  ;;  %2091 = vmatprep.mubr.msk.f32.mxu0 %vm2235_vm2, %v2234_v42 }
 0x4d3   :  { %2094 = vmatprep.subr.mxu0 %v2234_v42 }
 0x4d5   :  { %2092 = vmatmul.mubr.msk.f32.vlgmr.msra.gmra.mxu0 %vm1083_vm4, %v1753_v46 }
 0x4d6   :  { %2095 = vmatpush3.msra.mxu0 %v1762_v47  ;;  %2110 = vmatprep.mubr.msk.f32.mxu0 %vm2235_vm2, %v2234_v42 }
 0x4d7   :  { %2096 = vmatprep.subr.mxu0 %v2234_v42 }
 0x4d8   :  { %2097 = vmatpush3.msra.mxu0 %v1761_v48 }
 0x4d9   :  { %2098 = vmatprep.subr.mxu0 %v2234_v42 }
 0x4da   :  { %2099 = vmatpush3.msra.mxu0 %v1760_v49 }
 0x4db   :  { %2100 = vmatprep.subr.mxu0 %v2234_v42 }
 0x4dc   :  { %2101 = vmatpush3.msra.mxu0 %v1759_v50 }
 0x4dd   :  { %2102 = vmatprep.subr.mxu0 %v2234_v42 }
 0x4de   :  { %2103 = vmatpush3.msra.mxu0 %v1758_v51 }
 0x4df   :  { %2104 = vmatprep.subr.mxu0 %v2234_v42 }
 0x4e0   :  { %2105 = vmatpush3.msra.mxu0 %v1757_v52 }
 0x4e1   :  { %2106 = vmatprep.subr.mxu0 %v2234_v42 }
 0x4e2   :  { %2107 = vmatpush3.msra.mxu0 %v1756_v53 }
 0x4e3   :  { %2108 = vmatprep.subr.mxu0 %v2234_v42 }
 0x4e4   :  { %2109 = vmatpush3.msra.mxu0 %v1755_v54 }
 0x4e5   :  { %2132 = vmatprep.subr.mxu0 %v2234_v42 }
 0x591   :  { %v1153_v55 = vpop.f32.mrf.mxu0 }
 0x592   :  { %2130 = vmatmul.mubr.msk.f32.vlgmr.msra.gmra.mxu1 %vm252_vm1, %v1153_v55 }
 0x593   :  { %2157 = vmatpush3.msra.mxu1 %v1081_v44  ;;  %v2088_v56 = vpop.f32.mrf.mxu0  ;;  %2158 = vmatprep.mubr.msk.f32.mxu1 %vm2235_vm2, %v2234_v42 }
 0x594   :  { %2161 = vmatprep.subr.mxu1 %v2234_v42 }
 0x595   :  { %v1236_v58 = vpop.f32.mrf.mxu0 }
 0x596   :  { %2111 = vmatmul.mubr.msk.f32.vlgmr.msra.gmra.mxu0 %vm252_vm1, %v1236_v58  ;;  %2159 = vmatmul.mubr.msk.f32.vlgmr.msra.gmra.mxu1 %vm1083_vm4, %v1776_v57 }
 0x597   :  { %2133 = vmatpush3.msra.mxu0 %v1081_v44  ;;  %v2093_v60 = vpop.f32.mrf.mxu0  ;;  %2134 = vmatprep.mubr.msk.f32.mxu0 %vm2235_vm2, %v2234_v42 }
 0x598   :  { %2137 = vmatprep.subr.mxu0 %v2234_v42  ;;  %2162 = vmatpush3.msra.mxu1 %v1785_v59 }
 0x599   :  { %2163 = vmatprep.subr.mxu1 %v2234_v42  ;;  %2177 = vmatprep.mubr.msk.f32.mxu1 %vm2235_vm2, %v2234_v42 }
 0x59a   :  { %2135 = vmatmul.mubr.msk.f32.vlgmr.msra.gmra.mxu0 %vm1083_vm4, %v1765_v61  ;;  %2164 = vmatpush3.msra.mxu1 %v1784_v62 }
 0x59b   :  { %2138 = vmatpush3.msra.mxu0 %v1774_v63  ;;  %2165 = vmatprep.subr.mxu1 %v2234_v42 }
 0x59c   :  { %2139 = vmatprep.subr.mxu0 %v2234_v42  ;;  %2166 = vmatpush3.msra.mxu1 %v1783_v0 }
 0x59d   :  { %2140 = vmatpush3.msra.mxu0 %v1773_v1  ;;  %2167 = vmatprep.subr.mxu1 %v2234_v42 }
 0x59e   :  { %2141 = vmatprep.subr.mxu0 %v2234_v42  ;;  %2153 = vmatprep.mubr.msk.f32.mxu0 %vm2235_vm2, %v2234_v42 }
 0x59f   :  { %2142 = vmatpush3.msra.mxu0 %v1772_v2  ;;  %2168 = vmatpush3.msra.mxu1 %v1782_v5 }
 0x5a0   :  { %2143 = vmatprep.subr.mxu0 %v2234_v42  ;;  %2169 = vmatprep.subr.mxu1 %v2234_v42 }
 0x5a1   :  { %2144 = vmatpush3.msra.mxu0 %v1771_v3  ;;  %2170 = vmatpush3.msra.mxu1 %v1781_v6 }
 0x5a2   :  { %2145 = vmatprep.subr.mxu0 %v2234_v42  ;;  %2171 = vmatprep.subr.mxu1 %v2234_v42 }
 0x5a3   :  { %2146 = vmatpush3.msra.mxu0 %v1770_v4  ;;  %2172 = vmatpush3.msra.mxu1 %v1780_v8 }
 0x5a4   :  { %2147 = vmatprep.subr.mxu0 %v2234_v42  ;;  %2173 = vmatprep.subr.mxu1 %v2234_v42 }
 0x5a5   :  { %2148 = vmatpush3.msra.mxu0 %v1769_v7  ;;  %2174 = vmatpush3.msra.mxu1 %v1779_v10 }
 0x5a6   :  { %2149 = vmatprep.subr.mxu0 %v2234_v42  ;;  %2175 = vmatprep.subr.mxu1 %v2234_v42 }
 0x5a7   :  { %2150 = vmatpush3.msra.mxu0 %v1768_v9  ;;  %2176 = vmatpush3.msra.mxu1 %v1778_v12 }
 0x5a8   :  { %2151 = vmatprep.subr.mxu0 %v2234_v42 }
 0x5a9   :  { %2152 = vmatpush3.msra.mxu0 %v1767_v11 }
 0x652   :  { %v1391_v13 = vpop.f32.mrf.mxu1 }
 0x654   :  { %v2131_v14 = vpop.f32.mrf.mxu1 }
 0x656   :  { %v1318_v15 = vpop.f32.mrf.mxu0  ;;  %v1624_v16 = vpop.f32.mrf.mxu1 }
 0x657   :  { %v1392_v17 = vadd.f32 %v1391_v13, %v1318_v15  ;;  %2178 = vmatmul.mubr.msk.f32.vlgmr.msra.gmra.mxu1 %vm252_vm1, %v1624_v16 }
 0x658   :  { %v2112_v18 = vpop.f32.mrf.mxu0  ;;  %v2160_v19 = vpop.f32.mrf.mxu1 }
 0x65a   :  { %v1466_v20 = vpop.f32.mrf.mxu0 }
 0x65b   :  { %2154 = vmatmul.mubr.msk.f32.vlgmr.msra.gmra.mxu0 %vm252_vm1, %v1466_v20 }
 0x65c   :  { %v2136_v21 = vpop.f32.mrf.mxu0 }
 0x717   :  { %v1706_v42 = vpop.f32.mrf.mxu1 }
 0x719   :  { %v2179_v22 = vpop.f32.mrf.mxu1 }
 0x71b   :  { %v1548_v23 = vpop.f32.mrf.mxu0 }
 0x71c   :  { %v1552_v24 = vadd.f32 %v1548_v23, %v1392_v17 }
 0x71d   :  { %v2155_v26 = vpop.f32.mrf.mxu0 }
 0x71e   :  { %v1710_v27 = vadd.f32 %v1706_v42, %v1552_v24 }
 0x720   :  { %v1718_v28 = vadd.f32 %v1787_v25, %v1710_v27 }
 0x722   :  { %1719 = vst [vmem:[%s2618_s10] sm:$0xff] %v1718_v28 }
 0x723   :  { %1724 = vsyncpa [#allocation3], 1 }
 0x724   :  { %1725 = vsyncpa [#allocation5], 1 }

</bundles_post_ra>
